<compile_context>
chip_gen: v6e
topology: v6e:2x2x1
jax: 0.10.0
libtpu: 0.0.40
codegen_flags: <defaults>
</compile_context>

<pallas_src>
import jax
import jax.numpy as jnp
from jax import lax
from jax.experimental import pallas as pl
from jax.experimental.pallas import tpu as pltpu


# ----------------------------- kernels ------------------------------------ #

def _conv_tap_kernel(p_ref, w_ref, b_ref, o_ref, acc_ref):
    # p_ref: (1, 1, Cin, TP) bf16    w_ref: (1, Cout, Cin) bf16
    # b_ref: (Cout, 1) f32           o_ref: (1, Cout, TP)
    # acc_ref: (Cout, TP) f32 scratch, persists over the 9-tap reduction axis.
    t = pl.program_id(2)

    @pl.when(t == 0)
    def _():
        acc_ref[...] = jnp.zeros_like(acc_ref)

    acc_ref[...] += jnp.dot(w_ref[0], p_ref[0, 0],
                            preferred_element_type=jnp.float32)

    @pl.when(t == pl.num_programs(2) - 1)
    def _():
        o_ref[0] = (acc_ref[...] + b_ref[...]).astype(o_ref.dtype)


def _maxpool_kernel(x_ref, o_ref):
    # x_ref: (1, 4, TC, Ho*Wo) -- 4 corners of each 2x2 window; o_ref: (1, TC, Ho*Wo)
    x = x_ref[0]
    o_ref[0] = jnp.maximum(jnp.maximum(x[0], x[1]), jnp.maximum(x[2], x[3]))


# ----------------------------- tiling helpers ------------------------------ #

def _pick_p_tile(P):
    # Lane-dense P tile: multiple of 128 when possible, else the full dim
    # (full-extent last dim also satisfies the (8, 128) block rule).
    for tp in (512, 256, 128):
        if P % tp == 0:
            return tp
    return P


def _pick_c_tile(C, HoWo, itemsize, budget=2 * 1024 * 1024):
    # TC must divide C and be a multiple of 8 (or the full C) for the block
    # rule; keep the 4-corner input block under ~2 MiB (fits v7x comfortably).
    divs = [d for d in range(1, C + 1) if C % d == 0 and (d == C or d % 8 == 0)]
    fit = [d for d in divs if 4 * d * HoWo * itemsize <= budget]
    return max(fit) if fit else min(divs)


# ----------------------------- wrappers ------------------------------------ #

def conv_downsample(x, weight_oihw, bias):
    """3x3 conv, stride 2, padding 1.  x: (N, Cin, H, W) NCHW, weight OIHW."""
    N, Cin, H, W = x.shape
    Cout = weight_oihw.shape[0]
    Ho = (H + 2 - 3) // 2 + 1
    Wo = (W + 2 - 3) // 2 + 1
    P = Ho * Wo

    # Glue (pure indexing): per-tap strided slices of the padded NCHW input,
    # laid out as (N, 9, Cin, P) so each tap is produced/consumed exactly once.
    xp = jnp.pad(x, ((0, 0), (0, 0), (1, 1), (1, 1)))
    taps = [xp[:, :, dy:dy + 2 * Ho - 1:2, dx:dx + 2 * Wo - 1:2]
            for dy in range(3) for dx in range(3)]
    patches = jnp.stack(taps, axis=1).reshape(N, 9, Cin, P).astype(jnp.bfloat16)

    # Per-tap weight (9, Cout, Cin); kernel computes w_t @ patch_t -> (Cout, TP)
    # so the output is already NCHW-ordered with the spatial tile on lanes.
    w9 = jnp.transpose(weight_oihw, (2, 3, 0, 1)).reshape(9, Cout, Cin)
    w9 = w9.astype(jnp.bfloat16)
    b2 = bias.reshape(Cout, 1).astype(jnp.float32)

    TP = _pick_p_tile(P)
    grid = (N, P // TP, 9)

    flops = 2 * N * P * (9 * Cin) * Cout
    bytes_accessed = (patches.size * patches.dtype.itemsize
                      + w9.size * w9.dtype.itemsize
                      + b2.size * 4
                      + N * Cout * P * x.dtype.itemsize)

    out = pl.pallas_call(
        _conv_tap_kernel,
        out_shape=jax.ShapeDtypeStruct((N, Cout, P), x.dtype),
        grid=grid,
        in_specs=[
            pl.BlockSpec((1, 1, Cin, TP), lambda n, p, t: (n, t, 0, p)),
            pl.BlockSpec((1, Cout, Cin), lambda n, p, t: (t, 0, 0)),
            pl.BlockSpec((Cout, 1), lambda n, p, t: (0, 0)),
        ],
        out_specs=pl.BlockSpec((1, Cout, TP), lambda n, p, t: (n, 0, p)),
        scratch_shapes=[pltpu.VMEM((Cout, TP), jnp.float32)],
        compiler_params=pltpu.CompilerParams(
            dimension_semantics=("parallel", "parallel", "arbitrary"),
            vmem_limit_bytes=32 * 1024 * 1024),
        cost_estimate=pl.CostEstimate(flops=flops, transcendentals=0,
                                      bytes_accessed=bytes_accessed),
    )(patches, w9, b2)

    return out.reshape(N, Cout, Ho, Wo)


def maxpool_downsample(x):
    """2x2 max pool, stride 2 (PyTorch floor behavior).  x: (N, C, H, W)."""
    N, C, H, W = x.shape
    Ho, Wo = H // 2, W // 2
    HoWo = Ho * Wo
    xc = x[:, :, :2 * Ho, :2 * Wo]
    # Glue: gather 2x2 window corners; lane dim = full Ho*Wo plane (dense).
    corners = jnp.stack(
        [xc[:, :, dy::2, dx::2] for dy in range(2) for dx in range(2)], axis=1)
    corners = corners.reshape(N, 4, C, HoWo)

    TC = _pick_c_tile(C, HoWo, x.dtype.itemsize)
    grid = (N, C // TC)

    out = pl.pallas_call(
        _maxpool_kernel,
        out_shape=jax.ShapeDtypeStruct((N, C, HoWo), x.dtype),
        grid=grid,
        in_specs=[pl.BlockSpec((1, 4, TC, HoWo), lambda n, c: (n, 0, c, 0))],
        out_specs=pl.BlockSpec((1, TC, HoWo), lambda n, c: (n, c, 0)),
        compiler_params=pltpu.CompilerParams(
            dimension_semantics=("parallel", "parallel"),
            vmem_limit_bytes=32 * 1024 * 1024),
    )(corners)

    return out.reshape(N, C, Ho, Wo)


class Downsample:
    """JAX/Pallas port of Downsample (dims=2).  Parameters are synthetic."""

    def __init__(self, channels, use_conv, dims=2, out_channels=None,
                 padding=1, key=None):
        assert dims == 2, "only dims=2 implemented"  # TODO(synk): dims=1 / dims=3 variants
        assert padding == 1
        self.channels = channels
        self.out_channels = out_channels or channels
        self.use_conv = use_conv
        if use_conv:
            key = jax.random.PRNGKey(0) if key is None else key
            kw, kb = jax.random.split(key)
            fan_in = channels * 9
            bound = 1.0 / (fan_in ** 0.5)
            # PyTorch Conv2d layout: (Cout, Cin, kh, kw)
            self.weight = jax.random.uniform(
                kw, (self.out_channels, channels, 3, 3), jnp.float32, -bound, bound)
            self.bias = jax.random.uniform(
                kb, (self.out_channels,), jnp.float32, -bound, bound)
        else:
            assert self.channels == self.out_channels

    def __call__(self, x):
        assert x.shape[1] == self.channels
        if self.use_conv:
            return conv_downsample(x, self.weight, self.bias)
        return maxpool_downsample(x)


# ------------------------------- main -------------------------------------- #

if __name__ == "__main__":
    key = jax.random.PRNGKey(0)
    x = jax.random.normal(key, (2, 4, 16, 16), jnp.float32)  # NCHW

    # use_conv=True path
    ds_conv = Downsample(channels=4, use_conv=True, dims=2, key=jax.random.PRNGKey(1))
    y_conv = jax.block_until_ready(ds_conv(x))
    ref_conv = lax.conv_general_dilated(
        x, ds_conv.weight, window_strides=(2, 2), padding=((1, 1), (1, 1)),
        dimension_numbers=("NCHW", "OIHW", "NCHW"),
        precision=lax.Precision.HIGHEST) + ds_conv.bias.reshape(1, -1, 1, 1)
    assert y_conv.shape == (2, 4, 8, 8)
    # bf16 MXU operands with f32 accumulation -> slightly loose tolerance.
    assert jnp.allclose(y_conv, ref_conv, rtol=2e-2, atol=2e-2)

    # use_conv=False (max pool) path
    ds_pool = Downsample(channels=4, use_conv=False, dims=2)
    y_pool = jax.block_until_ready(ds_pool(x))
    ref_pool = lax.reduce_window(
        x, -jnp.inf, lax.max, (1, 1, 2, 2), (1, 1, 2, 2), "VALID")
    assert y_pool.shape == (2, 4, 8, 8)
    assert jnp.allclose(y_pool, ref_pool)

    print("KERNEL_OK")
</pallas_src>

<mosaic_0001>
module attributes {stable_mosaic.version = 11 : i64} {
  func.func @_conv_tap_kernel(%arg0: i32, %arg1: i32, %arg2: i32, %arg3: memref<1x1x4x64xbf16, #tpu.memory_space<vmem>>, %arg4: memref<1x4x4xbf16, #tpu.memory_space<vmem>>, %arg5: memref<4x1xf32, #tpu.memory_space<vmem>>, %arg6: memref<1x4x64xf32, #tpu.memory_space<vmem>>, %arg7: memref<4x64xf32, #tpu.memory_space<vmem>>) attributes {dimension_semantics = [#tpu.dimension_semantics<parallel>, #tpu.dimension_semantics<parallel>, #tpu.dimension_semantics<arbitrary>], iteration_bounds = array<i64: 2, 1, 9>, scalar_prefetch = 0 : i64, scratch_operands = 1 : i64, tpu.core_type = #tpu.core_type<tc>, window_params = [{transform_indices = @transform_0, window_bounds = array<i64: 1, 1, 4, 64>}, {transform_indices = @transform_1, window_bounds = array<i64: 1, 4, 4>}, {pipeline_mode = #tpu.pipeline_mode<synchronous>, transform_indices = @transform_2, window_bounds = array<i64: 4, 1>}, {transform_indices = @transform_3, window_bounds = array<i64: 1, 4, 64>}]} {
    %c0_i32 = arith.constant 0 : i32
    %0 = arith.cmpi eq, %arg2, %c0_i32 : i32
    %1 = arith.extui %0 : i1 to i32
    %c0_i32_0 = arith.constant 0 : i32
    %2 = arith.cmpi ne, %1, %c0_i32_0 : i32
    scf.if %2 {
      %cst_12 = arith.constant 0.000000e+00 : f32
      %14 = vector.broadcast %cst_12 : f32 to vector<4x64xf32>
      %c0_13 = arith.constant 0 : index
      %c0_14 = arith.constant 0 : index
      %15 = vector.load %arg7[%c0_13, %c0_14] : memref<4x64xf32, #tpu.memory_space<vmem>>, vector<4x64xf32>
      tpu.vector_store %arg7[%c0_13, %c0_14], %14 {strides = array<i32>} : memref<4x64xf32, #tpu.memory_space<vmem>>, vector<4x64xf32>,
    } else {
    }
    %c0 = arith.constant 0 : index
    %c0_1 = arith.constant 0 : index
    %3 = vector.load %arg7[%c0, %c0_1] : memref<4x64xf32, #tpu.memory_space<vmem>>, vector<4x64xf32>
    %c0_2 = arith.constant 0 : index
    %c0_3 = arith.constant 0 : index
    %c0_4 = arith.constant 0 : index
    %4 = vector.load %arg4[%c0_2, %c0_3, %c0_4] : memref<1x4x4xbf16, #tpu.memory_space<vmem>>, vector<1x4x4xbf16>
    %5 = vector.shape_cast %4 : vector<1x4x4xbf16> to vector<4x4xbf16>
    %c0_5 = arith.constant 0 : index
    %c0_6 = arith.constant 0 : index
    %c0_7 = arith.constant 0 : index
    %c0_8 = arith.constant 0 : index
    %6 = vector.load %arg3[%c0_5, %c0_6, %c0_7, %c0_8] : memref<1x1x4x64xbf16, #tpu.memory_space<vmem>>, vector<1x1x4x64xbf16>
    %7 = vector.shape_cast %6 : vector<1x1x4x64xbf16> to vector<4x64xbf16>
    %cst = arith.constant dense<0.000000e+00> : vector<4x64xf32>
    %8 = tpu.matmul %5, %7, %cst {dimension_numbers = #tpu.dot_dimension_numbers<[1], [0], [0], [1], [0, 0, 1, 1], [], []>} : vector<4x4xbf16>, vector<4x64xbf16>, vector<4x64xf32> -> vector<4x64xf32>
    %9 = arith.addf %3, %8 : vector<4x64xf32>
    %c0_9 = arith.constant 0 : index
    %c0_10 = arith.constant 0 : index
    %10 = vector.load %arg7[%c0_9, %c0_10] : memref<4x64xf32, #tpu.memory_space<vmem>>, vector<4x64xf32>
    tpu.vector_store %arg7[%c0_9, %c0_10], %9 {strides = array<i32>} : memref<4x64xf32, #tpu.memory_space<vmem>>, vector<4x64xf32>,
    %c8_i32 = arith.constant 8 : i32
    %11 = arith.cmpi eq, %arg2, %c8_i32 : i32
    %12 = arith.extui %11 : i1 to i32
    %c0_i32_11 = arith.constant 0 : i32
    %13 = arith.cmpi ne, %12, %c0_i32_11 : i32
    scf.if %13 {
      %c0_12 = arith.constant 0 : index
      %c0_13 = arith.constant 0 : index
      %14 = vector.load %arg7[%c0_12, %c0_13] : memref<4x64xf32, #tpu.memory_space<vmem>>, vector<4x64xf32>
      %c0_14 = arith.constant 0 : index
      %c0_15 = arith.constant 0 : index
      %15 = vector.load %arg5[%c0_14, %c0_15] : memref<4x1xf32, #tpu.memory_space<vmem>>, vector<4x1xf32>
      %16 = vector.broadcast %15 : vector<4x1xf32> to vector<4x64xf32>
      %17 = arith.addf %14, %16 : vector<4x64xf32>
      %c0_16 = arith.constant 0 : index
      %c0_17 = arith.constant 0 : index
      %c0_18 = arith.constant 0 : index
      %18 = vector.load %arg6[%c0_16, %c0_17, %c0_18] : memref<1x4x64xf32, #tpu.memory_space<vmem>>, vector<1x4x64xf32>
      %19 = vector.shape_cast %18 : vector<1x4x64xf32> to vector<4x64xf32>
      %20 = vector.shape_cast %17 : vector<4x64xf32> to vector<1x4x64xf32>
      tpu.vector_store %arg6[%c0_16, %c0_17, %c0_18], %20 {strides = array<i32>} : memref<1x4x64xf32, #tpu.memory_space<vmem>>, vector<1x4x64xf32>,
    } else {
    }
    return
  }
  func.func @transform_0(%arg0: i32, %arg1: i32, %arg2: i32) -> (i32, i32, i32, i32) {
    %c0_i32 = arith.constant 0 : i32
    %c0_i32_0 = arith.constant 0 : i32
    return %arg0, %arg2, %c0_i32, %arg1 : i32, i32, i32, i32
  }
  func.func @transform_1(%arg0: i32, %arg1: i32, %arg2: i32) -> (i32, i32, i32) {
    %c0_i32 = arith.constant 0 : i32
    %c0_i32_0 = arith.constant 0 : i32
    %c0_i32_1 = arith.constant 0 : i32
    return %arg2, %c0_i32, %c0_i32_0 : i32, i32, i32
  }
  func.func @transform_2(%arg0: i32, %arg1: i32, %arg2: i32) -> (i32, i32) {
    %c0_i32 = arith.constant 0 : i32
    %c0_i32_0 = arith.constant 0 : i32
    %c0_i32_1 = arith.constant 0 : i32
    return %c0_i32, %c0_i32_0 : i32, i32
  }
  func.func @transform_3(%arg0: i32, %arg1: i32, %arg2: i32) -> (i32, i32, i32) {
    %c0_i32 = arith.constant 0 : i32
    %c0_i32_0 = arith.constant 0 : i32
    return %arg0, %c0_i32, %arg1 : i32, i32, i32
  }
}

</mosaic_0001>

<bundles_post_ra>
// kernel: tpu_custom_call.1
= control target key start
LH: loop header
LB: loop body
LE: loop exit
PB: predicated region body
PF: predicated region fallthrough
CT: control target
= control target key end

     0   :  { %8 = vsyncpa [#allocation4], 0  ;;  %s928_s0 = inlined_call_operand.hbm [shape: bf16[2,9,4,64], index: 0, kind: input, shape index: {}]   ;;  %s929_s1 = inlined_call_operand.vmem [shape: bf16[9,4,4], index: 1, kind: input, shape index: {}]   ;;  %s930_s2 = inlined_call_operand.vmem [shape: f32[4,1], index: 2, kind: input, shape index: {}]   ;;  %s931_s3 = inlined_call_operand.hbm [shape: f32[2,4,64], index: 3, kind: output, shape index: {}]  }
   0x1   :  { %10 = vsyncpa [#allocation4 + $0x1], 0 }
   0x2   :  { %11 = vsyncpa [#allocation5], 0 }
   0x3   :  { %13 = vsyncpa [#allocation5 + $0x1], 0  ;;  %s729_s12 = smov 0   ;;  %s731_s13 = smov 0  }
   0x4   :  { %s733_s14 = smov 0   ;;  %s735_s15 = smov 0  }
   0x5   :  { %s737_s16 = smov 0   ;;  %s739_s17 = smov 0  }
   0x6   :  { %s741_s18 = smov 0   ;;  %s743_s19 = smov 0  }
   0x7   :  { %s745_s20 = smov 0   ;;  %s747_s21 = smov 0  }
   0x8   :  { %s749_s22 = smov 0  }
   0x9 LB: > { %935 = sst [smem:[#allocation9_spill]] %s697_s21  ;;  %s420_s23 = sadd.s32 4294967295, %s701_s22   ;;  %s701_s22 = sphi %s749_s22, %s19_s22   ;;  %s697_s21 = sphi %s747_s21, %s948_s21   ;;  %s693_s20 = sphi %s745_s20, %s956_s20   ;;  %s689_s19 = sphi %s743_s19, %s946_s19   ;;  %s685_s18 = sphi %s741_s18, %s955_s18   ;;  %s681_s17 = sphi %s739_s17, %s954_s17   ;;  %s677_s16 = sphi %s737_s16, %s953_s16   ;;  %s673_s15 = sphi %s735_s15, %s952_s15   ;;  %s669_s14 = sphi %s733_s14, %s951_s14   ;;  %s665_s13 = sphi %s731_s13, %s950_s13   ;;  %s661_s12 = sphi %s729_s12, %s949_s12  }
   0xa   : > { %s421_s24 = sadd.s32 4294967294, %s701_s22   ;;  %s31_s25 = sadd.s32 1, %s693_s20 }
   0xb   : > { %s38_s26 = sadd.s32 1, %s697_s21  ;;  %p32_p0 = scmp.ge.s32.totalorder %s31_s25, 9 }
   0xc   : > { %s49_s27 = sadd.s32 1, %s681_s17  ;;  %p56_p1 = scmp.ne.s32.totalorder %s681_s17, %s677_s16 }
   0xd   : > { %p57_p2 = scmp.eq.s32.totalorder %s701_s22, 0  ;;  %s958_s25 = smov (%p32_p0, %s31_s25), 0 }
   0xe   : > { %936 = sst [smem:[#allocation10_spill]] %s958_s25  ;;  %s960_s26 = smov (!%p32_p0, %s38_s26), %s697_s21 }
   0xf   : > { %s43_s28 = ssub.s32 %s693_s20, %s958_s25  ;;  %p795_p3 = por %p57_p2, %p56_p1 }
  0x10   : > { %p40_p4 = scmp.ge.s32.totalorder %s960_s26, 2  ;;  %p62_p5 = scmp.ne.s32.totalorder %s677_s16, %s673_s15 }
  0x11   : > { %p63_p6 = scmp.eq.s32.totalorder %s420_s23, 0  ;;  %s124_s30 = sadd.s32 1, %s669_s14 }
  0x12   : > { %s962_s26 = smov (%p40_p4, %s960_s26), 0  ;;  %p134_p8 = scmp.ne.s32.totalorder %s669_s14, %s665_s13 }
  0x13   : > { %938 = sst [smem:[#allocation11_spill]] %s962_s26  ;;  %p803_p7 = por %p63_p6, %p62_p5 }
  0x14   : > { %s42_s5 = ssub.s32 %s697_s21, %s962_s26  ;;  %p135_p9 = scmp.eq.s32.totalorder %s420_s23, 17 }
  0x15   : > { %s44_s6 = sor.u32 %s43_s28, %s42_s5  ;;  %p122_p10 = scmp.eq.s32.totalorder %s42_s5, 0 }
  0x16   : > { %p47_p11 = scmp.eq.s32.totalorder %s44_s6, 0  ;;  %p811_p12 = por %p135_p9, %p134_p8 }
  0x17   : > { %s816_s8 = scalar_select %p122_p10, %s669_s14, %s124_s30  }
  0x18   : > { %s819_s9 = scalar_select %p47_p11, %s681_s17, %s49_s27  }
  0x19   : > { %p140_p13 = scmp.ne.s32.totalorder %s665_s13, %s661_s12  ;;  %p141_p0 = scmp.eq.s32.totalorder %s421_s24, 17 }
  0x1a   : > { %941 = sst [smem:[#allocation12_spill]] %s819_s9  ;;  %p458_p1 = scmp.lt.s32.totalorder %s701_s22, 18 }
  0x1b   : > { %p824_p2 = por %p141_p0, %p140_p13  ;;  %s164_s11 = sand.u32 1, %s681_s17  }
  0x1c   : > { %s424_s15 = sshll.u32 %s164_s11, 1  ;;  %s445_s23 = smul.u32 9, %s697_s21 }
  0x1d   : > { %s942_s10 = scalar_select %p824_p2, 1, 0 }
  0x1e   : > { %s168_s28 = scalar_lea.vmem [#allocation3], %s424_s15  ;;  %p832_p4 = pnand %p458_p1, %p795_p3 }
  0x1f   : > { %s178_s5 = sshll.u32 %s168_s28, 4  ;;  %s174_s27 = sadd.s32 %s693_s20, %s445_s23  ;;  %s179_s5 = int_to_ptr.vmem [resolvable:$true] %s178_s5 }
  0x20   : > { %s425_s30 = sshll.u32 %s174_s27, 5  ;;  %p426_p5 = scmp.ge.s32.totalorder %s701_s22, 1 }
  0x21   : > { %s176_s25 = scalar_lea.hbm %s928_s0, %s425_s30  ;;  %s165_s9 = scalar_lea.sflag [#allocation4], %s164_s11 }
  0x22   : > { %p555_p6 = pneg %p832_p4  ;;  %s566_s21 = scalar_lea.vmem %s179_s5, 32 }
  0x23   : > { %p567_p8 = scmp.ne.s32.totalorder %s179_s5, %s566_s21  ;;  %s703_s29 = smov [#allocation3]  }
  0x24   : > { %s571_s15 = sshll.u32 %s703_s29, 4  ;;  %s572_s15 = int_to_ptr.vmem [resolvable:$false] %s571_s15 }
  0x25   : > { %p569_p9 = pnand %p567_p8, %p555_p6  ;;  %s573_s28 = scalar_lea.vmem %s572_s15, 64 }
  0x26   : > { %p574_p3 = scmp.lt.s32.totalorder %s179_s5, %s572_s15  ;;  %p575_p11 = scmp.lt.s32.totalorder %s573_s28, %s566_s21 }
  0x27   : > { %p570_p10 = pneg %p569_p9 }
  0x28   : > { %p576_p13 = por %p575_p11, %p574_p3 }
  0x2a   : > { %p577_p0 = pnand %p576_p13, %p570_p10 }
  0x2c   : > { %580 = shalt.err (!%p577_p0)
}
  0x2d   : > { %453 = dma.hbm_to_vmem [thread:$0]  (!%p832_p4), %s176_s25, 32, %s179_s5, %s165_s9  }
  0x2e   : > { %p190_p1 = scmp.lt.s32.totalorder %s701_s22, 19 }
  0x30   : > { %p191_p2 = pnand %p426_p5, %p190_p1 }
  0x31   : > { %s196_s26 = sand.u32 (!%p191_p2), 1, %s677_s16  }
  0x32   : > { %194 = sbr.rel (%p191_p2) target bundleno = 422 (0x1a6), region = 32  ;;  %s427_s11 = sshll.u32 (!%p191_p2), %s196_s26, 1 }
  0x33   : > { %s197_s23 = scalar_lea.sflag (!%p191_p2), [#allocation4], %s196_s26  ;;  %s200_s27 = scalar_lea.vmem (!%p191_p2), [#allocation3], %s427_s11 }
  0x37   : > { %652 = dma.done.wait (%p803_p7), %s197_s23, 32  }
  0x38   : > { %654 = vsyncadd (%p803_p7), %s197_s23, 4294967264  ;;  %s224_s21 = sand.u32 1, %s665_s13   ;;  %p227_p4 = scmp.lt.s32.totalorder %s685_s18, 8 }
  0x39   : > { %s857_s25 = sshll.u32 %s224_s21, 2  ;;  %p430_p2 = scmp.ne.s32.totalorder %s685_s18, 0 }
  0x3a   : > { %s228_s9 = scalar_select %p227_p4, %s685_s18, 8 }
  0x3b   : > { %s226_s29 = scalar_lea.vmem [#allocation6], %s857_s25  ;;  %235 = sbr.rel (%p430_p2) target bundleno = 66 (0x42), region = 40 }
  0x3c   : > { %s429_s5 = sshll.u32 %s228_s9, 1 }
  0x3d   : > { %s230_s24 = scalar_lea.vmem %s929_s1, %s429_s5 }
  0x40   : > { %vm236_vm0 = vcmask 519168   ;;  %v704_v0 = vmov 0.0  }
  0x41   : > { %237 = vst.msk [vmem:[#allocation2] sm:$0xf] %vm236_vm0, %v704_v0 }
  0x42 PF: > { %v240_v1 = vld [vmem:[%s200_s27] sm:$0x3]  ;;  %vm245_vm1 = vcmask 1041408   ;;  %v705_v2 = vmov 0.0   ;;  %vm706_vm2 = vmmov 0   ;;  %vm241_vm3 = vcmask 31744  }
  0x43   : > { %439 = vmatprep.subr.bf16.mxu0 %v705_v2  ;;  %v247_v3 = vsel %vm245_vm1, %v240_v1, 0  ;;  %441 = vmatprep.mubr.msk.bf16.mxu0 %vm706_vm2, %v705_v2  ;;  %v239_v4 = vld [vmem:[%s230_s24] sm:$0x3]  ;;  %vm290_vm4 = vcmask 519168   ;;  %p432_p7 = scmp.ne.s32.totalorder %s685_s18, 8 }
  0x44   : > { %440 = vmatpush3.bf16.msra.mxu0 %v247_v3 }
  0x47   : > { %442 = vmatmul.mubr.msk.bf16.vlgmr.msra.gmra.mxu0 %vm241_vm3, %v239_v4 }
  0x48   : > { %v238_v5 = vld [vmem:[#allocation2] sm:$0xf] }
 0x107   : > { %v283_v6 = vpop.f32.mrf.mxu0 }
 0x108   : > { %v289_v7 = vadd.f32 %v283_v6, %v238_v5 }
 0x109   : > { %v443_v8 = vpop.f32.mrf.mxu0  ;;  %295 = sbr.rel (%p432_p7) target bundleno = 399 (0x18f), region = 44 }
 0x10a   : > { %291 = vst.msk [vmem:[#allocation2] sm:$0xf] %vm290_vm4, %v289_v7 }
 0x10b   : > { %v286_v9 = vpop.f32.mrf.mxu0 }
 0x10d   : > { %v444_v10 = vpop.f32.mrf.mxu0 }
 0x10e   : > { %v297_v11 = vld [vmem:[%s930_s2] sm:$0xf]  ;;  %v707_v12 = vmov 0  }
 0x10f   : > { %552 = vset.pattern.permute.xlu0 %v707_v12 }
 0x110   : > { %300 = vperm.xlu0 %552, %v297_v11  }
 0x111   : > { %v296_v13 = vld [vmem:[#allocation2] sm:$0xf] }
 0x18b   : > { %v301_v14 = vpop.permute.xlu0 %300 }
 0x18c   : > { %v303_v15 = vadd.f32 %v301_v14, %v296_v13 }
 0x18e   : > { %304 = vst.msk [vmem:[%s226_s29] sm:$0xf] %vm290_vm4, %v303_v15 }
 0x18f PF: > { %s434_s18 = sshll.u32 %s689_s19, 6  ;;  %s320_s23 = sshll.u32 %s226_s29, 4  ;;  %s321_s23 = int_to_ptr.vmem [resolvable:$true] %s320_s23 }
 0x190   : > { %s318_s11 = scalar_lea.hbm %s931_s3, %s434_s18  ;;  %s306_s27 = scalar_lea.sflag [#allocation5], %s224_s21 }
 0x191   : > { %s581_s9 = scalar_lea.vmem %s321_s23, 64  ;;  %s708_s5 = smov [#allocation6]  }
 0x192   : > { %p582_p5 = scmp.ne.s32.totalorder %s321_s23, %s581_s9  ;;  %s585_s6 = sshll.u32 %s708_s5, 4  ;;  %s586_s6 = int_to_ptr.vmem [resolvable:$false] %s585_s6 }
 0x193   : > { %s587_s30 = scalar_lea.vmem %s586_s6, 128  ;;  %p588_p9 = scmp.lt.s32.totalorder %s321_s23, %s586_s6 }
 0x194   : > { %p583_p6 = pnand %p582_p5, %p811_p12  ;;  %p589_p10 = scmp.lt.s32.totalorder %s587_s30, %s581_s9 }
 0x196   : > { %p584_p8 = pneg %p583_p6  ;;  %p590_p3 = por %p589_p10, %p588_p9 }
 0x198   : > { %p591_p11 = pnand %p590_p3, %p584_p8 }
 0x19a   : > { %594 = shalt.err (!%p591_p11)
}
 0x19b   : > { %s595_s19 = scalar_lea.hbm %s318_s11, 64  ;;  %s599_s24 = scalar_lea.hbm %s931_s3, 128 }
 0x19c   : > { %p596_p13 = scmp.ne.s32.totalorder %s318_s11, %s595_s19  ;;  %p600_p4 = scmp.lt.s32.totalorder %s318_s11, %s931_s3 }
 0x19d   : > { %p601_p2 = scmp.lt.s32.totalorder %s599_s24, %s595_s19 }
 0x19e   : > { %p597_p0 = pnand %p596_p13, %p811_p12 }
 0x19f   : > { %p602_p7 = por %p601_p2, %p600_p4 }
 0x1a0   : > { %p598_p1 = pneg %p597_p0 }
 0x1a2   : > { %p603_p5 = pnand %p602_p7, %p598_p1 }
 0x1a4   : > { %606 = shalt.err (!%p603_p5)
}
 0x1a5   : > { %448 = dma.vmem_to_hbm [thread:$0]  (%p811_p12), %s321_s23, 64, %s318_s11, %s306_s27  }
 0x1a6 PF: > { %p459_p6 = scmp.ge.s32.totalorder %s701_s22, 2  ;;  %s332_s15 = sand.u32 1, %s661_s12  }
 0x1a7   : > { %p944_p8 = scmp.ne.s32.totalorder %s942_s10, 0  ;;  %s333_s18 = scalar_lea.sflag [#allocation5], %s332_s15 }
 0x1a9   : > { %p455_p9 = pnand %p459_p6, %p944_p8 }
 0x1ab   : > { %p456_p10 = pneg %p455_p9 }
 0x1ad   : > { %656 = dma.done.wait (%p456_p10), %s333_s18, 64  }
 0x1ae   : > { %658 = vsyncadd (%p456_p10), %s333_s18, 4294967232  ;;  %s19_s22 = sadd.s32 1, %s701_s22   ;;  %s945_s7 = sld [smem:[#allocation12_spill]] }
 0x1af   : > { %p16_p3 = scmp.ge.s32.totalorder %s19_s22, 20   ;;  %s946_s19 = sld [smem:[#allocation9_spill]] }
 0x1b0   : > { %s947_s28 = sld [smem:[#allocation10_spill]]  ;;  %s949_s12 = smov %s665_s13 }
 0x1b1   : > { %s948_s21 = sld [smem:[#allocation11_spill]]  ;;  %s950_s13 = smov %s669_s14 }
 0x1b2   : > { %s951_s14 = smov %s816_s8  ;;  %s952_s15 = smov %s677_s16 }
 0x1b3   : > { %s953_s16 = smov %s681_s17  ;;  %s955_s18 = smov %s693_s20 }
 0x1b4   : > { %s954_s17 = smov %s945_s7  ;;  %18 = sbr.rel (!%p16_p3) target bundleno = 9 (0x9), region = 88 }
 0x1b6   : > { %s956_s20 = smov %s947_s28 }
 0x1b9   :  { %338 = vsyncpa [#allocation4], 1 }
 0x1ba   :  { %340 = vsyncpa [#allocation4 + $0x1], 1 }
 0x1bb   :  { %341 = vsyncpa [#allocation5], 1 }
 0x1bc   :  { %343 = vsyncpa [#allocation5 + $0x1], 1 }

</bundles_post_ra>
